<compile_context>
chip_gen: v7x
topology: tpu7x:2x2x1
jax: 0.10.0
libtpu: 0.0.40
codegen_flags: <defaults>
</compile_context>

<pallas_src>
import jax
import jax.numpy as jnp
from jax.experimental import pallas as pl
from jax.experimental.pallas import tpu as pltpu


def _round_up(n: int, m: int) -> int:
    return (n + m - 1) // m * m


def _cdiv(a: int, b: int) -> int:
    return (a + b - 1) // b


def pred_model_kernel(x_ref, w1_ref, b1_ref, w2_ref, b2_ref, o_ref):
    # Cast the activation to bf16 *inside* the kernel (no extra wrapper pass).
    x = x_ref[...].astype(jnp.bfloat16)
    # inner model: h = relu(x @ W1 + b1)   (bf16 MXU matmul, f32 accumulate)
    h = jnp.maximum(
        jnp.dot(x, w1_ref[...], preferred_element_type=jnp.float32)
        + b1_ref[...],
        0.0,
    )
    # output head: y = h @ W2 + b2         (the module's self.out Linear)
    y = jnp.dot(h.astype(jnp.bfloat16), w2_ref[...],
                preferred_element_type=jnp.float32) + b2_ref[...]
    o_ref[...] = y.astype(o_ref.dtype)


def pred_model_forward(x, w1, b1, w2, b2):
    """x: [B, D_in], w1: [D_in, H], b1: [1, H], w2: [H, O], b2: [1, O] -> [B, O].

    Weights are stored pre-transposed ([in, out]) so x @ W + b matches
    torch.nn.Linear's x @ W.T + b.
    """
    B, D_in = x.shape
    H = w1.shape[1]
    O = w2.shape[1]
    out_dtype = x.dtype

    # --- batch tiling: up to 1024 rows/tile, >=2 grid steps when B >= 256 ----
    MAX_TB = 1024
    if B >= 256:
        grid_n = max(2, _cdiv(B, MAX_TB))      # v7x: both TCs get work
    else:
        grid_n = 1
    TB = _round_up(_cdiv(B, grid_n), 8)        # sublane-aligned tile rows
    B_pad = grid_n * TB                        # pad waste bounded to <~2%

    if B_pad != B:
        xp = jnp.pad(x, ((0, B_pad - B), (0, 0)))   # zero rows, sliced off below
    else:
        xp = x

    # Grid-invariant weights: tiny, pre-cast to bf16 once in the wrapper.
    w1b = w1.astype(jnp.bfloat16)
    w2b = w2.astype(jnp.bfloat16)
    b1f = b1.astype(jnp.float32)
    b2f = b2.astype(jnp.float32)

    # --- VMEM budget from actual tile bytes (double-buffered) + headroom ----
    x_tile = TB * D_in * 4                     # f32 input tile
    o_tile = TB * O * 4                        # f32 output tile
    h_tile = TB * H * 4                        # f32 intermediate
    w_bytes = (D_in * H + H * O) * 2 + (H + O) * 4
    vmem_limit = max(8 * 1024 * 1024,
                     4 * (2 * (x_tile + o_tile) + 2 * w_bytes + h_tile))

    # Honest cost estimate: true (unpadded) dims only.
    cost = pl.CostEstimate(
        flops=2 * B * (D_in * H + H * O),
        transcendentals=0,
        bytes_accessed=(B * D_in * 4            # x (f32)
                        + (D_in * H + H * O) * 2  # bf16 weights
                        + (H + O) * 4             # f32 biases
                        + B * O * 4),             # f32 output
    )

    inv = lambda i: (0, 0)  # grid-invariant (weights / biases)

    y = pl.pallas_call(
        pred_model_kernel,
        out_shape=jax.ShapeDtypeStruct((B_pad, O), out_dtype),
        grid=(grid_n,),
        in_specs=[
            pl.BlockSpec((TB, D_in), lambda i: (i, 0)),   # last dim == full D_in
            pl.BlockSpec((D_in, H), inv),                 # full-array blocks
            pl.BlockSpec((1, H), inv),
            pl.BlockSpec((H, O), inv),
            pl.BlockSpec((1, O), inv),
        ],
        out_specs=pl.BlockSpec((TB, O), lambda i: (i, 0)),  # true-width output
        compiler_params=pltpu.CompilerParams(
            dimension_semantics=("parallel",),   # v7x: shard batch across 2 TCs
            vmem_limit_bytes=int(vmem_limit),
        ),
        cost_estimate=cost,
    )(xp, w1b, b1f, w2b, b2f)

    # No output-lane slice needed; strip batch padding only if it was added.
    return y if B_pad == B else y[:B]


def init_params(key, d_in, hidden, out):
    """Deterministic synthetic parameters (no checkpoint load)."""
    k1, k2, k3, k4 = jax.random.split(key, 4)
    # mimic torch.nn.Linear's U(-1/sqrt(fan_in), 1/sqrt(fan_in)) scale
    s1 = 1.0 / jnp.sqrt(d_in)
    s2 = 1.0 / jnp.sqrt(hidden)
    w1 = jax.random.uniform(k1, (d_in, hidden), jnp.float32, -s1, s1)
    b1 = jax.random.uniform(k2, (1, hidden), jnp.float32, -s1, s1)
    w2 = jax.random.uniform(k3, (hidden, out), jnp.float32, -s2, s2)
    b2 = jax.random.uniform(k4, (1, out), jnp.float32, -s2, s2)
    return w1, b1, w2, b2


def reference_forward_f32(x, w1, b1, w2, b2):
    h = jnp.maximum(x @ w1 + b1, 0.0)
    return h @ w2 + b2


def reference_forward_bf16(x, w1, b1, w2, b2):
    """Mirrors the kernel's bf16-input / f32-accumulate arithmetic."""
    c = lambda a: a.astype(jnp.bfloat16).astype(jnp.float32)
    h = jnp.maximum(c(x) @ c(w1) + b1, 0.0)
    return c(h) @ c(w2) + b2


if __name__ == "__main__":
    # Small shapes implied by the forward:
    # ins -> model -> [B, model_output_size] -> Linear -> [B, output_size]
    batch, d_in, model_output_size, output_size = 8, 32, 32, 16

    key = jax.random.PRNGKey(0)
    kx, kp = jax.random.split(key)
    x = jax.random.normal(kx, (batch, d_in), dtype=jnp.float32)
    w1, b1, w2, b2 = init_params(kp, d_in, model_output_size, output_size)

    y = pred_model_forward(x, w1, b1, w2, b2)
    y = jax.block_until_ready(y)
    assert y.shape == (batch, output_size)

    # tight check vs a reference using the same bf16-in / f32-accumulate math
    y_ref_bf16 = reference_forward_bf16(x, w1, b1, w2, b2)
    assert jnp.allclose(y, y_ref_bf16, atol=1e-3, rtol=1e-3)

    # loose check vs the pure-f32 PyTorch-equivalent forward
    y_ref_f32 = reference_forward_f32(x, w1, b1, w2, b2)
    assert jnp.allclose(y, y_ref_f32, atol=5e-2, rtol=5e-2)

    print("KERNEL_OK")
</pallas_src>

<mosaic_0001>
module attributes {stable_mosaic.version = 11 : i64} {
  func.func @pred_model_kernel(%arg0: i32, %arg1: memref<8x32xf32, #tpu.memory_space<vmem>>, %arg2: memref<32x32xbf16, #tpu.memory_space<vmem>>, %arg3: memref<1x32xf32, #tpu.memory_space<vmem>>, %arg4: memref<32x16xbf16, #tpu.memory_space<vmem>>, %arg5: memref<1x16xf32, #tpu.memory_space<vmem>>, %arg6: memref<8x16xf32, #tpu.memory_space<vmem>>) attributes {dimension_semantics = [#tpu.dimension_semantics<parallel>], iteration_bounds = array<i64: 1>, scalar_prefetch = 0 : i64, scratch_operands = 0 : i64, tpu.core_type = #tpu.core_type<tc>, window_params = [{transform_indices = @transform_0, window_bounds = array<i64: 8, 32>}, {pipeline_mode = #tpu.pipeline_mode<synchronous>, transform_indices = @transform_1, window_bounds = array<i64: 32, 32>}, {pipeline_mode = #tpu.pipeline_mode<synchronous>, transform_indices = @transform_2, window_bounds = array<i64: 1, 32>}, {pipeline_mode = #tpu.pipeline_mode<synchronous>, transform_indices = @transform_3, window_bounds = array<i64: 32, 16>}, {pipeline_mode = #tpu.pipeline_mode<synchronous>, transform_indices = @transform_4, window_bounds = array<i64: 1, 16>}, {transform_indices = @transform_5, window_bounds = array<i64: 8, 16>}]} {
    %c0 = arith.constant 0 : index
    %c0_0 = arith.constant 0 : index
    %0 = vector.load %arg1[%c0, %c0_0] : memref<8x32xf32, #tpu.memory_space<vmem>>, vector<8x32xf32>
    %1 = arith.truncf %0 : vector<8x32xf32> to vector<8x32xbf16>
    %c0_1 = arith.constant 0 : index
    %c0_2 = arith.constant 0 : index
    %2 = vector.load %arg2[%c0_1, %c0_2] : memref<32x32xbf16, #tpu.memory_space<vmem>>, vector<32x32xbf16>
    %cst = arith.constant dense<0.000000e+00> : vector<8x32xf32>
    %3 = tpu.matmul %1, %2, %cst {dimension_numbers = #tpu.dot_dimension_numbers<[1], [0], [0], [1], [0, 0, 1, 1], [], []>} : vector<8x32xbf16>, vector<32x32xbf16>, vector<8x32xf32> -> vector<8x32xf32>
    %c0_3 = arith.constant 0 : index
    %c0_4 = arith.constant 0 : index
    %4 = vector.load %arg3[%c0_3, %c0_4] : memref<1x32xf32, #tpu.memory_space<vmem>>, vector<1x32xf32>
    %5 = vector.broadcast %4 : vector<1x32xf32> to vector<8x32xf32>
    %6 = arith.addf %3, %5 : vector<8x32xf32>
    %cst_5 = arith.constant 0.000000e+00 : f32
    %7 = vector.broadcast %cst_5 : f32 to vector<8x32xf32>
    %8 = arith.maximumf %6, %7 : vector<8x32xf32>
    %9 = arith.truncf %8 : vector<8x32xf32> to vector<8x32xbf16>
    %c0_6 = arith.constant 0 : index
    %c0_7 = arith.constant 0 : index
    %10 = vector.load %arg4[%c0_6, %c0_7] : memref<32x16xbf16, #tpu.memory_space<vmem>>, vector<32x16xbf16>
    %cst_8 = arith.constant dense<0.000000e+00> : vector<8x16xf32>
    %11 = tpu.matmul %9, %10, %cst_8 {dimension_numbers = #tpu.dot_dimension_numbers<[1], [0], [0], [1], [0, 0, 1, 1], [], []>} : vector<8x32xbf16>, vector<32x16xbf16>, vector<8x16xf32> -> vector<8x16xf32>
    %c0_9 = arith.constant 0 : index
    %c0_10 = arith.constant 0 : index
    %12 = vector.load %arg5[%c0_9, %c0_10] : memref<1x16xf32, #tpu.memory_space<vmem>>, vector<1x16xf32>
    %13 = vector.broadcast %12 : vector<1x16xf32> to vector<8x16xf32>
    %14 = arith.addf %11, %13 : vector<8x16xf32>
    %c0_11 = arith.constant 0 : index
    %c0_12 = arith.constant 0 : index
    %15 = vector.load %arg6[%c0_11, %c0_12] : memref<8x16xf32, #tpu.memory_space<vmem>>, vector<8x16xf32>
    tpu.vector_store %arg6[%c0_11, %c0_12], %14 {strides = array<i32>} : memref<8x16xf32, #tpu.memory_space<vmem>>, vector<8x16xf32>,
    return
  }
  func.func @transform_0(%arg0: i32) -> (i32, i32) {
    %c0_i32 = arith.constant 0 : i32
    %c0_i32_0 = arith.constant 0 : i32
    return %arg0, %c0_i32 : i32, i32
  }
  func.func @transform_1(%arg0: i32) -> (i32, i32) {
    %c0_i32 = arith.constant 0 : i32
    %c0_i32_0 = arith.constant 0 : i32
    %c0_i32_1 = arith.constant 0 : i32
    return %c0_i32, %c0_i32_0 : i32, i32
  }
  func.func @transform_2(%arg0: i32) -> (i32, i32) {
    %c0_i32 = arith.constant 0 : i32
    %c0_i32_0 = arith.constant 0 : i32
    %c0_i32_1 = arith.constant 0 : i32
    return %c0_i32, %c0_i32_0 : i32, i32
  }
  func.func @transform_3(%arg0: i32) -> (i32, i32) {
    %c0_i32 = arith.constant 0 : i32
    %c0_i32_0 = arith.constant 0 : i32
    %c0_i32_1 = arith.constant 0 : i32
    return %c0_i32, %c0_i32_0 : i32, i32
  }
  func.func @transform_4(%arg0: i32) -> (i32, i32) {
    %c0_i32 = arith.constant 0 : i32
    %c0_i32_0 = arith.constant 0 : i32
    %c0_i32_1 = arith.constant 0 : i32
    return %c0_i32, %c0_i32_0 : i32, i32
  }
  func.func @transform_5(%arg0: i32) -> (i32, i32) {
    %c0_i32 = arith.constant 0 : i32
    %c0_i32_0 = arith.constant 0 : i32
    return %arg0, %c0_i32 : i32, i32
  }
}

</mosaic_0001>

<bundles_post_ra>
// kernel: tpu_custom_call.1
= control target key start
LH: loop header
LB: loop body
LE: loop exit
PB: predicated region body
PF: predicated region fallthrough
CT: control target
= control target key end

     0   :  { %v236_v1 = vmov 0.0   ;;  %vm237_vm0 = vmmov 0   ;;  %s302_s0 = inlined_call_operand.vmem [shape: f32[8,32], index: 0, kind: input, shape index: {}]   ;;  %s303_s1 = inlined_call_operand.vmem [shape: bf16[32,32], index: 1, kind: input, shape index: {}]   ;;  %s304_s2 = inlined_call_operand.vmem [shape: f32[1,32], index: 2, kind: input, shape index: {}]   ;;  %s305_s3 = inlined_call_operand.vmem [shape: bf16[32,16], index: 3, kind: input, shape index: {}]   ;;  %s306_s4 = inlined_call_operand.vmem [shape: f32[1,16], index: 4, kind: input, shape index: {}]   ;;  %s307_s5 = inlined_call_operand.hbm [shape: f32[8,16], index: 5, kind: output, shape index: {}]  }
   0x1   :  { %v208_v0 = vld [vmem:[%s303_s1] sm:$0xff]   ;;  %189 = vmatprep.subr.bf16.mxu0 %v236_v1  ;;  %197 = vmatprep.subr.bf16.mxu1 %v236_v1  ;;  %v209_v2 = vld [vmem:[%s303_s1 + $0x8] sm:$0xff]  }
   0x2   :  { %190 = vmatpush3.bf16.msra.mxu0 %v208_v0  ;;  %193 = vmatprep.mubr.msk.bf16.mxu0 %vm237_vm0, %v236_v1  ;;  %v22_v3 = vld [vmem:[%s302_s0] sm:$0xff] }
   0x3   :  { %191 = vmatprep.subr.bf16.mxu0 %v236_v1  ;;  %201 = vmatprep.mubr.msk.bf16.mxu1 %vm237_vm0, %v236_v1 }
   0x4   :  { %10 = vsyncpa [#allocation3], 0  ;;  %v23_v4 = vpack.c.bf16 %v22_v3, %v22_v3  ;;  %vm47_vm1 = vcmask 261120   ;;  %v210_v5 = vld [vmem:[%s305_s3] sm:$0xff]   ;;  %v211_v6 = vld [vmem:[%s305_s3 + $0x8] sm:$0xff]   ;;  %s238_s30 = smov [#allocation2]  }
   0x5   :  { %198 = vmatpush3.bf16.msra.mxu1 %v210_v5  ;;  %v175_v7 = vld [vmem:[%s304_s2] ss:$0 sm:$0xff]  ;;  %s167_s6 = sshll.u32 %s238_s30, 4  ;;  %vm159_vm2 = vcmask 130048   ;;  %s168_s6 = int_to_ptr.vmem [resolvable:$true] %s167_s6 }
   0x6   :  { %192 = vmatpush3.bf16.msra.mxu0 %v209_v2  ;;  %199 = vmatprep.subr.bf16.mxu1 %v236_v1  ;;  %v179_v15 = vld [vmem:[%s306_s4] ss:$0 sm:$0xff]  ;;  %s212_s2 = scalar_lea.vmem %s168_s6, 128  ;;  %p217_p1 = scmp.lt.s32.totalorder %s168_s6, %s168_s6 }
   0x7   :  { %p213_p0 = scmp.ne.s32.totalorder %s168_s6, %s212_s2  ;;  %p218_p2 = scmp.lt.s32.totalorder %s212_s2, %s212_s2 }
   0x9   :  { %194 = vmatmul.mubr.msk.bf16.vlgmr.msra.gmra.mrb[0].mxu0 %vm47_vm1, %v23_v4  ;;  %200 = vmatpush3.bf16.msra.mxu1 %v211_v6  ;;  %p219_p3 = por %p218_p2, %p217_p1 }
   0xb   :  { %p220_p4 = pnand %p219_p3, %p213_p0 }
  0xdc   :  { %v85_v8 = vpop.f32.mrb[0].mxu0 }
  0xdd   :  { %v86_v9 = vadd.f32 %v175_v7, %v85_v8  ;;  %v195_v10 = vpop.f32.mrb[1].mxu0 }
  0xde   :  { %v88_v11 = vpop.f32.mrb[2].mxu0 }
  0xdf   :  { %v91_v12 = vmax.f32 %v86_v9, 0.0  ;;  %v196_v13 = vpop.f32.mrb[3].mxu0 }
  0xe1   :  { %v92_v14 = vpack.c.bf16 %v91_v12, %v91_v12 }
  0xe3   :  { %202 = vmatmul.mubr.msk.bf16.vlgmr.msra.gmra.mrb[0].mxu1 %vm47_vm1, %v92_v14 }
 0x1b6   :  { %v153_v16 = vpop.f32.mrb[0].mxu1 }
 0x1b7   :  { %v154_v17 = vadd.f32 %v179_v15, %v153_v16  ;;  %v203_v18 = vpop.f32.mrb[1].mxu1 }
 0x1b8   :  { %v156_v19 = vpop.f32.mrb[2].mxu1 }
 0x1b9   :  { %v204_v20 = vpop.f32.mrb[3].mxu1  ;;  %160 = vst.msk [vmem:[#allocation2] sm:$0xff] %vm159_vm2, %v154_v17 }
 0x1ba   :  { %223 = shalt.err (!%p220_p4)
}
 0x1bb   :  { %s224_s4 = scalar_lea.hbm %s307_s5, 128 }
 0x1bc   :  { %p225_p5 = scmp.ne.s32.totalorder %s307_s5, %s224_s4  ;;  %p228_p6 = scmp.lt.u32.totalorder %s224_s4, %s307_s5 }
 0x1be   :  { %p230_p7 = pnand %p228_p6, %p225_p5 }
 0x1c0   :  { %233 = shalt.err (!%p230_p7)
}
 0x1c1   :  { %170 = dma.vmem_to_hbm [thread:$0]  %s168_s6, 128, %s307_s5, [#allocation3]  }
 0x1c2   :  { %234 = dma.done.wait [#allocation3], 128  }
 0x1c3   :  { %235 = vsyncadd [#allocation3], 4294967168 }
 0x1c4   :  { %174 = vsyncpa [#allocation3], 1 }

</bundles_post_ra>
